<compile_context>
chip_gen: v6e
topology: v6e:2x2x1
jax: 0.10.0
libtpu: 0.0.40
codegen_flags: <defaults>
</compile_context>

<pallas_src>
import jax
import jax.numpy as jnp
from jax.experimental import pallas as pl
from jax.experimental.pallas import tpu as pltpu


def mlp_kernel(x_ref, w1t_ref, w2t_ref, o_ref, h_ref):
    # Layer 1: (TB, Kp) x (Kp, H1p) -> f32 hidden activation in VMEM scratch.
    h_ref[...] = jnp.dot(
        x_ref[...], w1t_ref[...], preferred_element_type=jnp.float32
    )
    # Layer 2: feed the MXU bf16 again, accumulate f32, store lane-dense f32.
    o_ref[...] = jnp.dot(
        h_ref[...].astype(jnp.bfloat16),
        w2t_ref[...],
        preferred_element_type=jnp.float32,
    ).astype(o_ref.dtype)


def _round_up(x, m):
    return ((x + m - 1) // m) * m


def torchmodel_forward(x, w1, w2, *, tb=256, tn=256):
    """Computes (x @ w1.T) @ w2.T with PyTorch nn.Linear weight layout.

    x  : (B, input_size)        float32
    w1 : (hidden1, input_size)  float32   (out_features, in_features)
    w2 : (hidden2, hidden1)     float32
    returns (B, hidden2) float32
    """
    B, K = x.shape
    H1 = w1.shape[0]
    H2 = w2.shape[0]

    # One-time transposes in the wrapper (cheap XLA op; free if weights are
    # stored pre-transposed) so no transpose ever runs inside the kernel.
    w1t = w1.T  # (K, H1)
    w2t = w2.T  # (H1, H2)

    # Hardware-tile padding.  Lane dims (K, H1, H2) -> multiples of 128;
    # output tile TN capped at 256 (v6e/v7x MXU width); batch -> row-tile
    # multiple (>= 8 sublanes).
    Kp = _round_up(K, 128)
    H1p = _round_up(H1, 128)
    TN = min(tn, _round_up(H2, 128))
    H2p = _round_up(H2, TN)
    TB = min(tb, _round_up(B, 8))
    Bp = _round_up(B, TB)

    xb = jnp.pad(x, ((0, Bp - B), (0, Kp - K))).astype(jnp.bfloat16)
    w1b = jnp.pad(w1t, ((0, Kp - K), (0, H1p - H1))).astype(jnp.bfloat16)
    w2b = jnp.pad(w2t, ((0, H1p - H1), (0, H2p - H2))).astype(jnp.bfloat16)

    grid = (Bp // TB, H2p // TN)

    # VMEM budget: double-buffered bf16 input tiles + double-buffered f32
    # output tile + f32 hidden scratch.  Capped at 48 MiB so the same tiling
    # fits v7x's 64 MiB physical VMEM.
    tile_bytes = (
        2 * 2 * (TB * Kp + Kp * H1p + H1p * TN)  # bf16 inputs, 2 buffers each
        + 2 * TB * TN * 4                        # f32 output tile, 2 buffers
        + TB * H1p * 4                           # f32 hidden scratch
    )
    vmem_limit = int(min(48 * 1024 * 1024, max(2 * tile_bytes, 32 * 1024 * 1024)))

    cost = pl.CostEstimate(
        flops=2 * Bp * (Kp * H1p + H1p * H2p),
        transcendentals=0,
        bytes_accessed=(xb.size + w1b.size + w2b.size) * 2 + Bp * H2p * 4,
    )

    out = pl.pallas_call(
        mlp_kernel,
        out_shape=jax.ShapeDtypeStruct((Bp, H2p), jnp.float32),
        grid_spec=pltpu.PrefetchScalarGridSpec(
            num_scalar_prefetch=0,
            grid=grid,
            in_specs=[
                pl.BlockSpec((TB, Kp), lambda i, j: (i, 0)),     # x row tile
                pl.BlockSpec((Kp, H1p), lambda i, j: (0, 0)),    # full w1.T
                pl.BlockSpec((H1p, TN), lambda i, j: (0, j)),    # w2.T out-tile
            ],
            out_specs=pl.BlockSpec((TB, TN), lambda i, j: (i, j)),
            scratch_shapes=[pltpu.VMEM((TB, H1p), jnp.float32)],
        ),
        compiler_params=pltpu.CompilerParams(
            dimension_semantics=("parallel", "parallel"),
            vmem_limit_bytes=vmem_limit,
        ),
        cost_estimate=cost,
    )(xb, w1b, w2b)

    # Strip the padding back off.
    return out[:B, :H2]


if __name__ == "__main__":
    # Module config consistent with the PyTorch script: input vectors of
    # length 5 (x = [1, 2, 3, 5, 1]), small hidden sizes, no bias.
    input_size, hidden1, hidden2 = 5, 8, 4
    batch = 2

    key = jax.random.PRNGKey(0)
    kx, k1, k2 = jax.random.split(key, 3)

    # Deterministic parameter init (synthetic weights, PyTorch Linear shapes).
    w1 = jax.random.normal(k1, (hidden1, input_size), dtype=jnp.float32) * 0.1
    w2 = jax.random.normal(k2, (hidden2, hidden1), dtype=jnp.float32) * 0.1

    # Example input; first row mirrors the script's x = [1, 2, 3, 5, 1].
    x0 = jnp.array([[1.0, 2.0, 3.0, 5.0, 1.0]], dtype=jnp.float32)
    x1 = jax.random.normal(kx, (batch - 1, input_size), dtype=jnp.float32)
    x = jnp.concatenate([x0, x1], axis=0)

    y = torchmodel_forward(x, w1, w2)
    y = jax.block_until_ready(y)

    # Sanity check vs. plain-JAX f32 reference; tolerance accounts for the
    # bf16 MXU inputs (accumulation is f32).
    y_ref = (x @ w1.T) @ w2.T
    assert y.shape == (batch, hidden2), (y.shape, (batch, hidden2))
    assert jnp.allclose(y, y_ref, atol=2e-2, rtol=2e-2), (y, y_ref)

    print("KERNEL_OK")
</pallas_src>

<mosaic_0001>
module attributes {stable_mosaic.version = 11 : i64} {
  func.func @mlp_kernel(%arg0: i32, %arg1: i32, %arg2: memref<8x128xbf16, #tpu.memory_space<vmem>>, %arg3: memref<128x128xbf16, #tpu.memory_space<vmem>>, %arg4: memref<128x128xbf16, #tpu.memory_space<vmem>>, %arg5: memref<8x128xf32, #tpu.memory_space<vmem>>, %arg6: memref<8x128xf32, #tpu.memory_space<vmem>>) attributes {dimension_semantics = [#tpu.dimension_semantics<parallel>, #tpu.dimension_semantics<parallel>], iteration_bounds = array<i64: 1, 1>, scalar_prefetch = 0 : i64, scratch_operands = 1 : i64, tpu.core_type = #tpu.core_type<tc>, window_params = [{transform_indices = @transform_0, window_bounds = array<i64: 8, 128>}, {pipeline_mode = #tpu.pipeline_mode<synchronous>, transform_indices = @transform_1, window_bounds = array<i64: 128, 128>}, {transform_indices = @transform_2, window_bounds = array<i64: 128, 128>}, {transform_indices = @transform_3, window_bounds = array<i64: 8, 128>}]} {
    %c0 = arith.constant 0 : index
    %c0_0 = arith.constant 0 : index
    %0 = vector.load %arg2[%c0, %c0_0] : memref<8x128xbf16, #tpu.memory_space<vmem>>, vector<8x128xbf16>
    %c0_1 = arith.constant 0 : index
    %c0_2 = arith.constant 0 : index
    %1 = vector.load %arg3[%c0_1, %c0_2] : memref<128x128xbf16, #tpu.memory_space<vmem>>, vector<128x128xbf16>
    %cst = arith.constant dense<0.000000e+00> : vector<8x128xf32>
    %2 = tpu.matmul %0, %1, %cst {dimension_numbers = #tpu.dot_dimension_numbers<[1], [0], [0], [1], [0, 0, 1, 1], [], []>} : vector<8x128xbf16>, vector<128x128xbf16>, vector<8x128xf32> -> vector<8x128xf32>
    %c0_3 = arith.constant 0 : index
    %c0_4 = arith.constant 0 : index
    %3 = vector.load %arg6[%c0_3, %c0_4] : memref<8x128xf32, #tpu.memory_space<vmem>>, vector<8x128xf32>
    tpu.vector_store %arg6[%c0_3, %c0_4], %2 {strides = array<i32>} : memref<8x128xf32, #tpu.memory_space<vmem>>, vector<8x128xf32>,
    %c0_5 = arith.constant 0 : index
    %c0_6 = arith.constant 0 : index
    %4 = vector.load %arg6[%c0_5, %c0_6] : memref<8x128xf32, #tpu.memory_space<vmem>>, vector<8x128xf32>
    %5 = arith.truncf %4 : vector<8x128xf32> to vector<8x128xbf16>
    %c0_7 = arith.constant 0 : index
    %c0_8 = arith.constant 0 : index
    %6 = vector.load %arg4[%c0_7, %c0_8] : memref<128x128xbf16, #tpu.memory_space<vmem>>, vector<128x128xbf16>
    %cst_9 = arith.constant dense<0.000000e+00> : vector<8x128xf32>
    %7 = tpu.matmul %5, %6, %cst_9 {dimension_numbers = #tpu.dot_dimension_numbers<[1], [0], [0], [1], [0, 0, 1, 1], [], []>} : vector<8x128xbf16>, vector<128x128xbf16>, vector<8x128xf32> -> vector<8x128xf32>
    %c0_10 = arith.constant 0 : index
    %c0_11 = arith.constant 0 : index
    %8 = vector.load %arg5[%c0_10, %c0_11] : memref<8x128xf32, #tpu.memory_space<vmem>>, vector<8x128xf32>
    tpu.vector_store %arg5[%c0_10, %c0_11], %7 {strides = array<i32>} : memref<8x128xf32, #tpu.memory_space<vmem>>, vector<8x128xf32>,
    return
  }
  func.func @transform_0(%arg0: i32, %arg1: i32) -> (i32, i32) {
    %c0_i32 = arith.constant 0 : i32
    %c0_i32_0 = arith.constant 0 : i32
    return %arg0, %c0_i32 : i32, i32
  }
  func.func @transform_1(%arg0: i32, %arg1: i32) -> (i32, i32) {
    %c0_i32 = arith.constant 0 : i32
    %c0_i32_0 = arith.constant 0 : i32
    %c0_i32_1 = arith.constant 0 : i32
    return %c0_i32, %c0_i32_0 : i32, i32
  }
  func.func @transform_2(%arg0: i32, %arg1: i32) -> (i32, i32) {
    %c0_i32 = arith.constant 0 : i32
    %c0_i32_0 = arith.constant 0 : i32
    return %c0_i32, %arg1 : i32, i32
  }
  func.func @transform_3(%arg0: i32, %arg1: i32) -> (i32, i32) {
    %c0_i32 = arith.constant 0 : i32
    return %arg0, %arg1 : i32, i32
  }
}

</mosaic_0001>

<bundles_post_ra>
// kernel: tpu_custom_call.1
= control target key start
LH: loop header
LB: loop body
LE: loop exit
PB: predicated region body
PF: predicated region fallthrough
CT: control target
= control target key end

     0   :  { %8 = vsyncpa [#allocation4], 0  ;;  %s508_s0 = inlined_call_operand.hbm [shape: bf16[8,128], index: 0, kind: input, shape index: {}]   ;;  %s509_s1 = inlined_call_operand.hbm [shape: bf16[128,128], index: 1, kind: input, shape index: {}]   ;;  %s510_s2 = inlined_call_operand.hbm [shape: bf16[128,128], index: 2, kind: input, shape index: {}]   ;;  %s511_s3 = inlined_call_operand.hbm [shape: f32[8,128], index: 3, kind: output, shape index: {}]  }
   0x1   :  { %9 = vsyncpa [#allocation7], 0 }
   0x2   :  { %10 = vsyncpa [#allocation5], 0  ;;  %s468_s12 = smov [#allocation6]  }
   0x3   :  { %s26_s13 = sshll.u32 %s468_s12, 4  ;;  %s27_s13 = int_to_ptr.vmem [resolvable:$true] %s26_s13 }
   0x4   :  { %s390_s14 = scalar_lea.vmem %s27_s13, 1024  ;;  %p395_p1 = scmp.lt.s32.totalorder %s27_s13, %s27_s13 }
   0x5   :  { %p391_p0 = scmp.ne.s32.totalorder %s27_s13, %s390_s14  ;;  %p396_p2 = scmp.lt.s32.totalorder %s390_s14, %s390_s14 }
   0x7   :  { %p397_p3 = por %p396_p2, %p395_p1 }
   0x9   :  { %p398_p4 = pnand %p397_p3, %p391_p0 }
   0xb   :  { %401 = shalt.err (!%p398_p4)
}
   0xc   :  { %s469_s15 = smov 64   ;;  %s470_s16 = smov 4  }
   0xd   :  { %32 = dma.hbm_to_vmem [thread:$0]  %s509_s1, 1024, %s27_s13, [#allocation7], %s469_s15, %s469_s15, %s470_s16  }
   0xe   :  { %s471_s19 = smov [#allocation3]   ;;  %s472_s21 = smov [#allocation8]  }
   0xf   :  { %s17_s20 = sshll.u32 %s471_s19, 4  ;;  %s38_s22 = sshll.u32 %s472_s21, 4  ;;  %s18_s20 = int_to_ptr.vmem [resolvable:$true] %s17_s20  ;;  %s39_s22 = int_to_ptr.vmem [resolvable:$true] %s38_s22 }
  0x10   :  { %s410_s23 = scalar_lea.vmem %s18_s20, 64  ;;  %p415_p6 = scmp.lt.s32.totalorder %s18_s20, %s18_s20 }
  0x11   :  { %p411_p5 = scmp.ne.s32.totalorder %s18_s20, %s410_s23  ;;  %p416_p7 = scmp.lt.s32.totalorder %s410_s23, %s410_s23 }
  0x13   :  { %p417_p8 = por %p416_p7, %p415_p6 }
  0x15   :  { %p418_p9 = pnand %p417_p8, %p411_p5 }
  0x17   :  { %421 = shalt.err (!%p418_p9)
}
  0x18   :  { %20 = dma.hbm_to_vmem [thread:$0]  %s508_s0, 64, %s18_s20, [#allocation4]  }
  0x19   :  { %s430_s26 = scalar_lea.vmem %s39_s22, 1024  ;;  %p435_p11 = scmp.lt.s32.totalorder %s39_s22, %s39_s22 }
  0x1a   :  { %p431_p10 = scmp.ne.s32.totalorder %s39_s22, %s430_s26  ;;  %p436_p12 = scmp.lt.s32.totalorder %s430_s26, %s430_s26 }
  0x1c   :  { %p437_p13 = por %p436_p12, %p435_p11 }
  0x1e   :  { %p438_p0 = pnand %p437_p13, %p431_p10 }
  0x20   :  { %441 = shalt.err (!%p438_p0)
}
  0x21   :  { %44 = dma.hbm_to_vmem [thread:$0]  %s510_s2, 1024, %s39_s22, [#allocation7], %s469_s15, %s469_s15, %s470_s16  }
  0x22   :  { %462 = dma.done.wait [#allocation4], 64  }
  0x23   :  { %463 = vsyncadd [#allocation4], 4294967232 }
  0x24   :  { %464 = dma.done.wait [#allocation7], 2048  }
  0x25   :  { %465 = vsyncadd [#allocation7], 4294965248  ;;  %v473_v0 = vmov 0.0   ;;  %vm474_vm0 = vmmov 0   ;;  %v366_v1 = vld [vmem:[#allocation6 + $0x38] sm:$0xff]   ;;  %v367_v2 = vld [vmem:[#allocation6 + $0x30] sm:$0xff]  }
  0x26   :  { %318 = vmatprep.subr.bf16.mxu0 %v473_v0  ;;  %334 = vmatprep.mubr.msk.bf16.mxu0 %vm474_vm0, %v473_v0  ;;  %v368_v3 = vld [vmem:[#allocation6 + $0x28] sm:$0xff]   ;;  %v374_v4 = vld [vmem:[#allocation8 + $0x38] sm:$0xff]   ;;  %v369_v5 = vld [vmem:[#allocation6 + $0x20] sm:$0xff]   ;;  %s475_s0 = smov [#allocation9]  }
  0x27   :  { %338 = vmatprep.subr.bf16.mxu1 %v473_v0  ;;  %354 = vmatprep.mubr.msk.bf16.mxu1 %vm474_vm0, %v473_v0  ;;  %v375_v6 = vld [vmem:[#allocation8 + $0x30] sm:$0xff]   ;;  %v370_v7 = vld [vmem:[#allocation6 + $0x18] sm:$0xff]   ;;  %v376_v8 = vld [vmem:[#allocation8 + $0x28] sm:$0xff]   ;;  %s274_s2 = sshll.u32 %s475_s0, 4  ;;  %s275_s2 = int_to_ptr.vmem [resolvable:$true] %s274_s2 }
  0x28   :  { %319 = vmatpush3.bf16.msra.mxu0 %v366_v1  ;;  %339 = vmatpush3.bf16.msra.mxu1 %v374_v4  ;;  %v371_v9 = vld [vmem:[#allocation6 + $0x10] sm:$0xff]   ;;  %v377_v10 = vld [vmem:[#allocation8 + $0x20] sm:$0xff]   ;;  %v372_v11 = vld [vmem:[#allocation6 + $0x8] sm:$0xff]   ;;  %s442_s28 = scalar_lea.vmem %s275_s2, 128  ;;  %p447_p2 = scmp.lt.s32.totalorder %s275_s2, %s275_s2 }
  0x29   :  { %320 = vmatprep.subr.bf16.mxu0 %v473_v0  ;;  %340 = vmatprep.subr.bf16.mxu1 %v473_v0  ;;  %v378_v12 = vld [vmem:[#allocation8 + $0x18] sm:$0xff]   ;;  %v373_v13 = vld [vmem:[#allocation6] sm:$0xff]   ;;  %v379_v14 = vld [vmem:[#allocation8 + $0x10] sm:$0xff]   ;;  %p443_p1 = scmp.ne.s32.totalorder %s275_s2, %s442_s28  ;;  %p448_p3 = scmp.lt.s32.totalorder %s442_s28, %s442_s28 }
  0x2a   :  { %v55_v15 = vld [vmem:[#allocation3] sm:$0xf]  ;;  %v380_v16 = vld [vmem:[#allocation8 + $0x8] sm:$0xff]   ;;  %v381_v17 = vld [vmem:[#allocation8] sm:$0xff]  }
  0x2b   :  { %p449_p4 = por %p448_p3, %p447_p2 }
  0x2c   :  { %321 = vmatpush3.bf16.msra.mxu0 %v367_v2  ;;  %341 = vmatpush3.bf16.msra.mxu1 %v375_v6 }
  0x2d   :  { %322 = vmatprep.subr.bf16.mxu0 %v473_v0  ;;  %342 = vmatprep.subr.bf16.mxu1 %v473_v0  ;;  %p450_p5 = pnand %p449_p4, %p443_p1 }
  0x30   :  { %323 = vmatpush3.bf16.msra.mxu0 %v368_v3  ;;  %343 = vmatpush3.bf16.msra.mxu1 %v376_v8 }
  0x31   :  { %324 = vmatprep.subr.bf16.mxu0 %v473_v0  ;;  %344 = vmatprep.subr.bf16.mxu1 %v473_v0 }
  0x34   :  { %325 = vmatpush3.bf16.msra.mxu0 %v369_v5  ;;  %345 = vmatpush3.bf16.msra.mxu1 %v377_v10 }
  0x35   :  { %326 = vmatprep.subr.bf16.mxu0 %v473_v0  ;;  %346 = vmatprep.subr.bf16.mxu1 %v473_v0 }
  0x38   :  { %327 = vmatpush3.bf16.msra.mxu0 %v370_v7  ;;  %347 = vmatpush3.bf16.msra.mxu1 %v378_v12 }
  0x39   :  { %328 = vmatprep.subr.bf16.mxu0 %v473_v0  ;;  %348 = vmatprep.subr.bf16.mxu1 %v473_v0 }
  0x3c   :  { %329 = vmatpush3.bf16.msra.mxu0 %v371_v9  ;;  %349 = vmatpush3.bf16.msra.mxu1 %v379_v14 }
  0x3d   :  { %330 = vmatprep.subr.bf16.mxu0 %v473_v0  ;;  %350 = vmatprep.subr.bf16.mxu1 %v473_v0 }
  0x40   :  { %331 = vmatpush3.bf16.msra.mxu0 %v372_v11  ;;  %351 = vmatpush3.bf16.msra.mxu1 %v380_v16 }
  0x41   :  { %332 = vmatprep.subr.bf16.mxu0 %v473_v0  ;;  %352 = vmatprep.subr.bf16.mxu1 %v473_v0 }
  0x44   :  { %333 = vmatpush3.bf16.msra.mxu0 %v373_v13  ;;  %353 = vmatpush3.bf16.msra.mxu1 %v381_v17 }
  0x47   :  { %335 = vmatmul.mubr.bf16.vlgmr.msra.gmra.mxu0 %v55_v15 }
 0x107   :  { %v154_v18 = vpop.f32.mrf.mxu0 }
 0x108   :  { %v162_v19 = vpack.c.bf16 %v154_v18, %v154_v18 }
 0x109   :  { %v336_v20 = vpop.f32.mrf.mxu0 }
 0x10a   :  { %355 = vmatmul.mubr.bf16.vlgmr.msra.gmra.mxu1 %v162_v19 }
 0x10b   :  { %v157_v21 = vpop.f32.mrf.mxu0 }
 0x10d   :  { %v337_v22 = vpop.f32.mrf.mxu0 }
 0x1ca   :  { %v261_v23 = vpop.f32.mrf.mxu1 }
 0x1cb   :  { %267 = vst [vmem:[#allocation9] sm:$0xff] %v261_v23 }
 0x1cc   :  { %v356_v24 = vpop.f32.mrf.mxu1 }
 0x1cd   :  { %453 = shalt.err (!%p450_p5)
}
 0x1ce   :  { %277 = dma.vmem_to_hbm [thread:$0]  %s275_s2, 128, %s511_s3, [#allocation5]   ;;  %v264_v25 = vpop.f32.mrf.mxu1 }
 0x1d0   :  { %v357_v26 = vpop.f32.mrf.mxu1 }
 0x1d1   :  { %466 = dma.done.wait [#allocation5], 128  }
 0x1d2   :  { %467 = vsyncadd [#allocation5], 4294967168 }
 0x1d3   :  { %281 = vsyncpa [#allocation4], 1 }
 0x1d4   :  { %282 = vsyncpa [#allocation7], 1 }
 0x1d5   :  { %283 = vsyncpa [#allocation5], 1 }

</bundles_post_ra>
